<compile_context>
chip_gen: v5e
topology: v5e:2x2
jax: 0.10.0
libtpu: 0.0.40
codegen_flags: <defaults>
</compile_context>

<pallas_src>
import jax
import jax.numpy as jnp
from jax.experimental import pallas as pl
from jax.experimental.pallas import tpu as pltpu

_EPS = 1e-6
_LANES = 128
_SUBLANES = 8
_NUM_CORES = 2                          # parallel split across v7x's two TCs
_VMEM_LIMIT_BYTES = 32 * 1024 * 1024


def _make_cel_kernel(rows, tile_rows, blocks_per_core, first_masked_block,
                     needs_mask):
    """Build the CEL partial-sum kernel with static shape/mask parameters."""
    chunks = tile_rows // _SUBLANES

    def kernel(pred_ref, target_ref, out_s_ref, out_i_ref):
        c = pl.program_id(0)            # TensorCore ("parallel") axis
        j = pl.program_id(1)            # streaming reduction ("arbitrary") axis

        @pl.when(j == 0)
        def _():
            out_s_ref[...] = jnp.zeros_like(out_s_ref)
            out_i_ref[...] = jnp.zeros_like(out_i_ref)

        # Cast in-register; inputs stream in their native dtype.
        p = pred_ref[...].astype(jnp.float32)
        t = target_ref[...].astype(jnp.float32)

        def accumulate(p_blk, t_blk):
            # Fold (tile_rows, 128) -> (8, 128): the reshape keeps every
            # (8, 128) tile intact so the axis-0 sum is pure vreg-wise VALU
            # adds (no XLU), and each accumulator stays a single vreg.
            s_blk = jnp.sum((p_blk + t_blk).reshape(chunks, _SUBLANES, _LANES),
                            axis=0)
            i_blk = jnp.sum((p_blk * t_blk).reshape(chunks, _SUBLANES, _LANES),
                            axis=0)
            out_s_ref[...] += s_blk
            out_i_ref[...] += i_blk

        if needs_mask:
            global_block = c * blocks_per_core + j

            # Fast path: fully in-bounds blocks skip all mask work.
            @pl.when(global_block < first_masked_block)
            def _():
                accumulate(p, t)

            # Slow path: the partial trailing block and/or the duplicated
            # block(s) created by rounding num_blocks up to the core count
            # (clamped in the index_map). Mask by *global* row index before
            # accumulation so out-of-range rows contribute nothing.
            @pl.when(global_block >= first_masked_block)
            def _():
                row_ids = (
                    jax.lax.broadcasted_iota(jnp.int32, (tile_rows, _LANES), 0)
                    + global_block * tile_rows)
                valid = row_ids < rows
                accumulate(jnp.where(valid, p, 0.0), jnp.where(valid, t, 0.0))
        else:
            accumulate(p, t)

    return kernel


def cel_loss(pred, target, tile_rows=4096):
    """Pallas implementation of CEL.forward. Returns a scalar float32."""
    assert pred.shape == target.shape
    n = pred.size
    itemsize = jnp.dtype(pred.dtype).itemsize

    p_flat = pred.reshape(-1)
    t_flat = target.reshape(-1)

    # Sub-128 lane tail: handled with plain jnp on <=127 elements so the main
    # slab never needs a padded copy (jnp.pad would re-stream both inputs).
    n_main = (n // _LANES) * _LANES
    s_rem = jnp.float32(0.0)
    i_rem = jnp.float32(0.0)
    if n_main != n:
        p_tail = p_flat[n_main:].astype(jnp.float32)
        t_tail = t_flat[n_main:].astype(jnp.float32)
        s_rem = jnp.sum(p_tail + t_tail)
        i_rem = jnp.sum(p_tail * t_tail)
        # TODO(synk): this prefix slice still copies the main slab once when
        # n % 128 != 0; a manual-DMA (memory_space=pl.ANY) variant could stream
        # the unpadded array directly.
        p_flat = jax.lax.slice(p_flat, (0,), (n_main,))
        t_flat = jax.lax.slice(t_flat, (0,), (n_main,))

    if n_main == 0:  # fewer than 128 elements: not worth a kernel launch
        return (s_rem - 2.0 * i_rem) / (s_rem + jnp.float32(_EPS))

    rows = n_main // _LANES
    p2d = p_flat.reshape(rows, _LANES)   # free reshape (contiguous)
    t2d = t_flat.reshape(rows, _LANES)

    # Tile sizing: multiple of 8 sublanes; big enough to amortize the fixed
    # per-grid-step overhead, small enough that 2 inputs x 2 pipeline buffers
    # stay within ~24 MiB (v7x has only 64 MiB physical VMEM per core).
    max_tile_rows = (24 * 1024 * 1024) // (4 * _LANES * itemsize)
    tile_rows = int(min(int(tile_rows), max_tile_rows,
                        pl.cdiv(rows, _SUBLANES) * _SUBLANES))
    tile_rows = max(_SUBLANES, (tile_rows // _SUBLANES) * _SUBLANES)

    num_blocks = pl.cdiv(rows, tile_rows)
    blocks_per_core = pl.cdiv(num_blocks, _NUM_CORES)
    total_blocks = _NUM_CORES * blocks_per_core
    # First global block index whose rows need masking: the partial trailing
    # block (rows % tile_rows != 0) and/or duplicated blocks from rounding
    # num_blocks up to the core count.
    first_masked_block = num_blocks - 1 if rows % tile_rows else num_blocks
    needs_mask = first_masked_block < total_blocks

    kernel = _make_cel_kernel(rows, tile_rows, blocks_per_core,
                              first_masked_block, needs_mask)

    def in_index_map(c, j):
        # Clamp duplicated blocks so the DMA stays in bounds; their
        # contribution is zeroed by the in-kernel mask, which uses the
        # *unclamped* global block index.
        return (jnp.minimum(c * blocks_per_core + j, num_blocks - 1), 0)

    in_spec = pl.BlockSpec((tile_rows, _LANES), in_index_map)
    # One vreg-shaped (8, 128) partial-sum block per core, resident in VMEM
    # across the whole reduction axis (accumulator pattern).
    out_spec = pl.BlockSpec((_SUBLANES, _LANES), lambda c, j: (c, 0))
    out_struct = jax.ShapeDtypeStruct((_NUM_CORES * _SUBLANES, _LANES),
                                      jnp.float32)

    out_s, out_i = pl.pallas_call(
        kernel,
        out_shape=(out_struct, out_struct),
        grid_spec=pltpu.PrefetchScalarGridSpec(
            num_scalar_prefetch=0,
            grid=(_NUM_CORES, blocks_per_core),
            in_specs=[in_spec, in_spec],
            out_specs=[out_spec, out_spec],
        ),
        compiler_params=pltpu.CompilerParams(
            dimension_semantics=("parallel", "arbitrary"),
            vmem_limit_bytes=_VMEM_LIMIT_BYTES,
        ),
        cost_estimate=pl.CostEstimate(
            flops=3 * n,
            transcendentals=0,
            bytes_accessed=2 * n * itemsize,
        ),
    )(p2d, t2d)

    s_total = jnp.sum(out_s) + s_rem
    i_total = jnp.sum(out_i) + i_rem
    return (s_total - 2.0 * i_total) / (s_total + jnp.float32(_EPS))


def cel_reference(pred, target):
    pred = pred.astype(jnp.float32)
    target = target.astype(jnp.float32)
    inter = pred * target
    numerator = jnp.sum(pred - inter) + jnp.sum(target - inter)
    denominator = jnp.sum(pred) + jnp.sum(target)
    return numerator / (denominator + _EPS)


if __name__ == "__main__":
    key = jax.random.PRNGKey(0)
    k1, k2 = jax.random.split(key)
    # Typical segmentation-style inputs: probabilities in [0, 1], NCHW.
    pred = jax.nn.sigmoid(jax.random.normal(k1, (2, 4, 16, 16), dtype=jnp.float32))
    target = (jax.random.uniform(k2, (2, 4, 16, 16)) > 0.5).astype(jnp.float32)

    out = jax.block_until_ready(cel_loss(pred, target))
    ref = cel_reference(pred, target)
    assert jnp.allclose(out, ref, atol=1e-5, rtol=1e-5), (out, ref)
    print("KERNEL_OK")
</pallas_src>

<mosaic_0001>
module attributes {stable_mosaic.version = 11 : i64} {
  func.func @kernel(%arg0: i32, %arg1: i32, %arg2: memref<16x128xf32, #tpu.memory_space<vmem>>, %arg3: memref<16x128xf32, #tpu.memory_space<vmem>>, %arg4: memref<8x128xf32, #tpu.memory_space<vmem>>, %arg5: memref<8x128xf32, #tpu.memory_space<vmem>>) attributes {dimension_semantics = [#tpu.dimension_semantics<parallel>, #tpu.dimension_semantics<arbitrary>], iteration_bounds = array<i64: 2, 1>, scalar_prefetch = 0 : i64, scratch_operands = 0 : i64, tpu.core_type = #tpu.core_type<tc>, window_params = [{transform_indices = @transform_0, window_bounds = array<i64: 16, 128>}, {transform_indices = @transform_1, window_bounds = array<i64: 16, 128>}, {transform_indices = @transform_2, window_bounds = array<i64: 8, 128>}, {transform_indices = @transform_3, window_bounds = array<i64: 8, 128>}]} {
    %c0_i32 = arith.constant 0 : i32
    %0 = arith.cmpi eq, %arg1, %c0_i32 : i32
    %1 = arith.extui %0 : i1 to i32
    %c0_i32_0 = arith.constant 0 : i32
    %2 = arith.cmpi ne, %1, %c0_i32_0 : i32
    scf.if %2 {
      %cst = arith.constant 0.000000e+00 : f32
      %13 = vector.broadcast %cst : f32 to vector<8x128xf32>
      %c0_8 = arith.constant 0 : index
      %c0_9 = arith.constant 0 : index
      %14 = vector.load %arg4[%c0_8, %c0_9] : memref<8x128xf32, #tpu.memory_space<vmem>>, vector<8x128xf32>
      tpu.vector_store %arg4[%c0_8, %c0_9], %13 {strides = array<i32>} : memref<8x128xf32, #tpu.memory_space<vmem>>, vector<8x128xf32>,
      %cst_10 = arith.constant 0.000000e+00 : f32
      %15 = vector.broadcast %cst_10 : f32 to vector<8x128xf32>
      %c0_11 = arith.constant 0 : index
      %c0_12 = arith.constant 0 : index
      %16 = vector.load %arg5[%c0_11, %c0_12] : memref<8x128xf32, #tpu.memory_space<vmem>>, vector<8x128xf32>
      tpu.vector_store %arg5[%c0_11, %c0_12], %15 {strides = array<i32>} : memref<8x128xf32, #tpu.memory_space<vmem>>, vector<8x128xf32>,
    } else {
    }
    %c0 = arith.constant 0 : index
    %c0_1 = arith.constant 0 : index
    %3 = vector.load %arg2[%c0, %c0_1] : memref<16x128xf32, #tpu.memory_space<vmem>>, vector<16x128xf32>
    %c0_2 = arith.constant 0 : index
    %c0_3 = arith.constant 0 : index
    %4 = vector.load %arg3[%c0_2, %c0_3] : memref<16x128xf32, #tpu.memory_space<vmem>>, vector<16x128xf32>
    %c1_i32 = arith.constant 1 : i32
    %5 = arith.muli %arg0, %c1_i32 : i32
    %6 = arith.addi %5, %arg1 : i32
    %c1_i32_4 = arith.constant 1 : i32
    %7 = arith.cmpi slt, %6, %c1_i32_4 : i32
    %8 = arith.extui %7 : i1 to i32
    %c0_i32_5 = arith.constant 0 : i32
    %9 = arith.cmpi ne, %8, %c0_i32_5 : i32
    scf.if %9 {
      %13 = arith.addf %3, %4 : vector<16x128xf32>
      %14 = vector.shape_cast %13 : vector<16x128xf32> to vector<2x8x128xf32>
      %cst = arith.constant dense<0.000000e+00> : vector<8x128xf32>
      %15 = vector.multi_reduction <add>, %14, %cst [0] : vector<2x8x128xf32> to vector<8x128xf32>
      %16 = arith.mulf %3, %4 : vector<16x128xf32>
      %17 = vector.shape_cast %16 : vector<16x128xf32> to vector<2x8x128xf32>
      %cst_8 = arith.constant dense<0.000000e+00> : vector<8x128xf32>
      %18 = vector.multi_reduction <add>, %17, %cst_8 [0] : vector<2x8x128xf32> to vector<8x128xf32>
      %c0_9 = arith.constant 0 : index
      %c0_10 = arith.constant 0 : index
      %19 = vector.load %arg4[%c0_9, %c0_10] : memref<8x128xf32, #tpu.memory_space<vmem>>, vector<8x128xf32>
      %20 = arith.addf %19, %15 : vector<8x128xf32>
      %c0_11 = arith.constant 0 : index
      %c0_12 = arith.constant 0 : index
      %21 = vector.load %arg4[%c0_11, %c0_12] : memref<8x128xf32, #tpu.memory_space<vmem>>, vector<8x128xf32>
      tpu.vector_store %arg4[%c0_11, %c0_12], %20 {strides = array<i32>} : memref<8x128xf32, #tpu.memory_space<vmem>>, vector<8x128xf32>,
      %c0_13 = arith.constant 0 : index
      %c0_14 = arith.constant 0 : index
      %22 = vector.load %arg5[%c0_13, %c0_14] : memref<8x128xf32, #tpu.memory_space<vmem>>, vector<8x128xf32>
      %23 = arith.addf %22, %18 : vector<8x128xf32>
      %c0_15 = arith.constant 0 : index
      %c0_16 = arith.constant 0 : index
      %24 = vector.load %arg5[%c0_15, %c0_16] : memref<8x128xf32, #tpu.memory_space<vmem>>, vector<8x128xf32>
      tpu.vector_store %arg5[%c0_15, %c0_16], %23 {strides = array<i32>} : memref<8x128xf32, #tpu.memory_space<vmem>>, vector<8x128xf32>,
    } else {
    }
    %c1_i32_6 = arith.constant 1 : i32
    %10 = arith.cmpi sge, %6, %c1_i32_6 : i32
    %11 = arith.extui %10 : i1 to i32
    %c0_i32_7 = arith.constant 0 : i32
    %12 = arith.cmpi ne, %11, %c0_i32_7 : i32
    scf.if %12 {
      %13 = tpu.iota {dimensions = array<i32: 0>} : vector<16x128xi32>
      %c16_i32 = arith.constant 16 : i32
      %14 = arith.muli %6, %c16_i32 : i32
      %15 = vector.broadcast %14 : i32 to vector<16x128xi32>
      %16 = arith.addi %13, %15 : vector<16x128xi32>
      %c16_i32_8 = arith.constant 16 : i32
      %17 = vector.broadcast %c16_i32_8 : i32 to vector<16x128xi32>
      %18 = arith.cmpi slt, %16, %17 : vector<16x128xi32>
      %cst = arith.constant 0.000000e+00 : f32
      %19 = vector.broadcast %cst : f32 to vector<16x128xf32>
      %20 = arith.select %18, %3, %19 : vector<16x128xi1>, vector<16x128xf32>
      %cst_9 = arith.constant 0.000000e+00 : f32
      %21 = vector.broadcast %cst_9 : f32 to vector<16x128xf32>
      %22 = arith.select %18, %4, %21 : vector<16x128xi1>, vector<16x128xf32>
      %23 = arith.addf %20, %22 : vector<16x128xf32>
      %24 = vector.shape_cast %23 : vector<16x128xf32> to vector<2x8x128xf32>
      %cst_10 = arith.constant dense<0.000000e+00> : vector<8x128xf32>
      %25 = vector.multi_reduction <add>, %24, %cst_10 [0] : vector<2x8x128xf32> to vector<8x128xf32>
      %26 = arith.mulf %20, %22 : vector<16x128xf32>
      %27 = vector.shape_cast %26 : vector<16x128xf32> to vector<2x8x128xf32>
      %cst_11 = arith.constant dense<0.000000e+00> : vector<8x128xf32>
      %28 = vector.multi_reduction <add>, %27, %cst_11 [0] : vector<2x8x128xf32> to vector<8x128xf32>
      %c0_12 = arith.constant 0 : index
      %c0_13 = arith.constant 0 : index
      %29 = vector.load %arg4[%c0_12, %c0_13] : memref<8x128xf32, #tpu.memory_space<vmem>>, vector<8x128xf32>
      %30 = arith.addf %29, %25 : vector<8x128xf32>
      %c0_14 = arith.constant 0 : index
      %c0_15 = arith.constant 0 : index
      %31 = vector.load %arg4[%c0_14, %c0_15] : memref<8x128xf32, #tpu.memory_space<vmem>>, vector<8x128xf32>
      tpu.vector_store %arg4[%c0_14, %c0_15], %30 {strides = array<i32>} : memref<8x128xf32, #tpu.memory_space<vmem>>, vector<8x128xf32>,
      %c0_16 = arith.constant 0 : index
      %c0_17 = arith.constant 0 : index
      %32 = vector.load %arg5[%c0_16, %c0_17] : memref<8x128xf32, #tpu.memory_space<vmem>>, vector<8x128xf32>
      %33 = arith.addf %32, %28 : vector<8x128xf32>
      %c0_18 = arith.constant 0 : index
      %c0_19 = arith.constant 0 : index
      %34 = vector.load %arg5[%c0_18, %c0_19] : memref<8x128xf32, #tpu.memory_space<vmem>>, vector<8x128xf32>
      tpu.vector_store %arg5[%c0_18, %c0_19], %33 {strides = array<i32>} : memref<8x128xf32, #tpu.memory_space<vmem>>, vector<8x128xf32>,
    } else {
    }
    return
  }
  func.func @transform_0(%arg0: i32, %arg1: i32) -> (i32, i32) {
    %c1_i32 = arith.constant 1 : i32
    %0 = arith.muli %arg0, %c1_i32 : i32
    %1 = arith.addi %0, %arg1 : i32
    %c0_i32 = arith.constant 0 : i32
    %2 = arith.minsi %1, %c0_i32 : i32
    %c0_i32_0 = arith.constant 0 : i32
    %c0_i32_1 = arith.constant 0 : i32
    return %2, %c0_i32_0 : i32, i32
  }
  func.func @transform_1(%arg0: i32, %arg1: i32) -> (i32, i32) {
    %c1_i32 = arith.constant 1 : i32
    %0 = arith.muli %arg0, %c1_i32 : i32
    %1 = arith.addi %0, %arg1 : i32
    %c0_i32 = arith.constant 0 : i32
    %2 = arith.minsi %1, %c0_i32 : i32
    %c0_i32_0 = arith.constant 0 : i32
    %c0_i32_1 = arith.constant 0 : i32
    return %2, %c0_i32_0 : i32, i32
  }
  func.func @transform_2(%arg0: i32, %arg1: i32) -> (i32, i32) {
    %c0_i32 = arith.constant 0 : i32
    %c0_i32_0 = arith.constant 0 : i32
    return %arg0, %c0_i32 : i32, i32
  }
  func.func @transform_3(%arg0: i32, %arg1: i32) -> (i32, i32) {
    %c0_i32 = arith.constant 0 : i32
    %c0_i32_0 = arith.constant 0 : i32
    return %arg0, %c0_i32 : i32, i32
  }
}

</mosaic_0001>

<bundles_post_ra>
// kernel: tpu_custom_call.1
= control target key start
LH: loop header
LB: loop body
LE: loop exit
PB: predicated region body
PF: predicated region fallthrough
CT: control target
= control target key end

     0   :  { %9 = vsyncpa [#allocation3], 0  ;;  %s1063_s0 = inlined_call_operand.hbm [shape: f32[16,128], index: 0, kind: input, shape index: {}]   ;;  %s1064_s1 = inlined_call_operand.hbm [shape: f32[16,128], index: 1, kind: input, shape index: {}]   ;;  %s1065_s2 = inlined_call_operand.hbm [shape: f32[16,128], index: 2, kind: output, shape index: {0}]   ;;  %s1066_s3 = inlined_call_operand.hbm [shape: f32[16,128], index: 3, kind: output, shape index: {1}]  }
   0x1   :  { %11 = vsyncpa [#allocation3 + $0x1], 0 }
   0x2   :  { %12 = vsyncpa [#allocation6], 0 }
   0x3   :  { %14 = vsyncpa [#allocation6 + $0x1], 0 }
   0x4   :  { %15 = vsyncpa [#allocation4], 0 }
   0x5   :  { %17 = vsyncpa [#allocation4 + $0x1], 0 }
   0x6   :  { %18 = vsyncpa [#allocation9], 0 }
   0x7   :  { %20 = vsyncpa [#allocation9 + $0x1], 0  ;;  %s858_s12 = smov 0   ;;  %s860_s13 = smov 0  }
   0x8   :  { %s862_s14 = smov 0   ;;  %s864_s15 = smov 0  }
   0x9   :  { %s866_s16 = smov 0   ;;  %s868_s17 = smov 0  }
   0xa   :  { %s870_s18 = smov 0   ;;  %s872_s19 = smov 0  }
   0xb LB: > { %s507_s20 = sadd.s32 4294967295, %s831_s19   ;;  %s508_s21 = sadd.s32 4294967294, %s831_s19   ;;  %s831_s19 = sphi %s872_s19, %s26_s19   ;;  %s827_s18 = sphi %s870_s18, %s1078_s18   ;;  %s823_s17 = sphi %s868_s17, %s1077_s17   ;;  %s819_s16 = sphi %s866_s16, %s1053_s16   ;;  %s815_s15 = sphi %s864_s15, %s1076_s15   ;;  %s811_s14 = sphi %s862_s14, %s1075_s14   ;;  %s807_s13 = sphi %s860_s13, %s1074_s13   ;;  %s803_s12 = sphi %s858_s12, %s1073_s12  }
   0xc   : > { %s38_s22 = sadd.s32 1, %s827_s18  ;;  %p800_p1 = scmp.ne.s32.totalorder %s819_s16, 0 }
   0xd   : > { %p40_p0 = scmp.ge.s32.totalorder %s38_s22, 2  ;;  %p59_p2 = scmp.eq.s32.totalorder %s831_s19, 0 }
   0xe   : > { %p64_p3 = scmp.ne.s32.totalorder %s819_s16, %s815_s15  ;;  %p65_p5 = scmp.eq.s32.totalorder %s507_s20, 0 }
   0xf   : > { %s1080_s22 = smov (%p40_p0, %s38_s22), 0  ;;  %p904_p4 = por %p800_p1, %p59_p2 }
  0x10   : > { %p908_p6 = por %p65_p5, %p64_p3  ;;  %s106_s25 = ssub.s32 %s827_s18, %s1080_s22 }
  0x11   : > { %p107_p7 = scmp.eq.s32.totalorder %s106_s25, 0  ;;  %s109_s26 = sadd.s32 1, %s811_s14 }
  0x12   : > { %p119_p8 = scmp.ne.s32.totalorder %s811_s14, %s807_s13  ;;  %p120_p9 = scmp.eq.s32.totalorder %s507_s20, 1 }
  0x13   : > { %s916_s27 = scalar_select %p107_p7, %s811_s14, %s109_s26  }
  0x14   : > { %p125_p10 = scmp.ne.s32.totalorder %s807_s13, %s803_s12  ;;  %p126_p11 = scmp.eq.s32.totalorder %s508_s21, 1 }
  0x15   : > { %p922_p12 = por %p120_p9, %p119_p8  ;;  %p510_p13 = scmp.ge.s32.totalorder %s831_s19, 2 }
  0x16   : > { %p927_p0 = por %p126_p11, %p125_p10  ;;  %p555_p1 = scmp.lt.s32.totalorder %s831_s19, 2 }
  0x17   : > { %s185_s5 = sshll.u32 %s1063_s0, 4  ;;  %s833_s6 = smov [#allocation2]   ;;  %s186_s5 = int_to_ptr.hbm [resolvable:$true] %s185_s5 }
  0x18   : > { %s187_s7 = sshll.u32 %s833_s6, 4  ;;  %p937_p2 = pnand %p555_p1, %p904_p4  ;;  %s188_s7 = int_to_ptr.vmem [resolvable:$true] %s187_s7 }
  0x19   : > { %p517_p3 = scmp.ge.s32.totalorder %s831_s19, 1  ;;  %p220_p5 = scmp.lt.s32.totalorder %s831_s19, 3 }
  0x1a   : > { %s632_s9 = sshra.s32 %s186_s5, 4  ;;  %p636_p8 = pneg %p937_p2  ;;  %s633_s9 = int_to_ptr.hbm [resolvable:$true] %s632_s9 }
  0x1b   : > { %s634_s10 = scalar_lea.hbm %s633_s9, 16  ;;  %s639_s20 = scalar_lea.hbm %s1063_s0, 16 }
  0x1c   : > { %p635_p7 = scmp.ne.s32.totalorder %s633_s9, %s634_s10  ;;  %p641_p4 = scmp.lt.s32.totalorder %s639_s20, %s634_s10 }
  0x1e   : > { %p637_p9 = pnand %p636_p8, %p635_p7 }
  0x20   : > { %p638_p10 = pneg %p637_p9 }
  0x22   : > { %p643_p11 = pnand %p641_p4, %p638_p10 }
  0x24   : > { %646 = shalt.err (!%p643_p11)
}
  0x25   : > { %s834_s21 = smov 128   ;;  %s835_s23 = smov 8  }
  0x26   : > { %544 = dma.hbm_to_vmem [thread:$0]  (!%p937_p2), %s186_s5, 256, %s188_s7, [#allocation3], %s834_s21, %s834_s21, %s835_s23  }
  0x27   : > { %p957_p1 = pnand %p517_p3, %p220_p5  ;;  %s210_s4 = sshll.u32 %s1064_s1, 4  ;;  %s211_s4 = int_to_ptr.hbm [resolvable:$true] %s210_s4 }
  0x28   : > { %s836_s6 = smov [#allocation5]   ;;  %s662_s10 = sshra.s32 %s211_s4, 4  ;;  %s663_s10 = int_to_ptr.hbm [resolvable:$true] %s662_s10 }
  0x29   : > { %s212_s9 = sshll.u32 %s836_s6, 4  ;;  %s664_s11 = scalar_lea.hbm %s663_s10, 16  ;;  %s213_s9 = int_to_ptr.vmem [resolvable:$true] %s212_s9 }
  0x2a   : > { %p665_p7 = scmp.ne.s32.totalorder %s663_s10, %s664_s11  ;;  %s669_s15 = scalar_lea.hbm %s1064_s1, 16 }
  0x2b   : > { %p671_p3 = scmp.lt.s32.totalorder %s669_s15, %s664_s11 }
  0x2c   : > { %p667_p9 = pnand %p665_p7, %p636_p8 }
  0x2e   : > { %p668_p10 = pneg %p667_p9 }
  0x30   : > { %p673_p5 = pnand %p671_p3, %p668_p10 }
  0x32   : > { %676 = shalt.err (!%p673_p5)
}
  0x33   : > { %547 = dma.hbm_to_vmem [thread:$0]  (!%p937_p2), %s211_s4, 256, %s213_s9, [#allocation6], %s834_s21, %s834_s21, %s835_s23  }
  0x34   : > { %224 = sbr.rel (%p957_p1) target bundleno = 130 (0x82), region = 28  ;;  %s226_s20 = sand.u32 (!%p957_p1), 1, %s819_s16  }
  0x35   : > { %s518_s26 = sshll.u32 (!%p957_p1), %s226_s20, 4  ;;  %s227_s30 = scalar_lea.sflag (!%p957_p1), [#allocation3], %s226_s20 }
  0x36   : > { %s230_s6 = scalar_lea.vmem (!%p957_p1), [#allocation2], %s518_s26 }
  0x39   : > { %785 = dma.done.wait (%p908_p6), %s227_s30, 256  }
  0x3a   : > { %787 = vsyncadd (%p908_p6), %s227_s30, 4294967040  ;;  %s237_s10 = scalar_lea.sflag [#allocation6], %s226_s20  ;;  %s240_s11 = scalar_lea.vmem [#allocation5], %s518_s26 }
  0x3b   : > { %789 = dma.done.wait (%p908_p6), %s237_s10, 256  }
  0x3c   : > { %791 = vsyncadd (%p908_p6), %s237_s10, 4294967040  ;;  %s984_s8 = sand.u32 1, %s807_s13   ;;  %v837_v0 = vmov 0.0   ;;  %v288_v1 = vld [vmem:[%s230_s6] sm:$0xff]  ;;  %v289_v2 = vld [vmem:[%s230_s6 + $0x8] sm:$0xff]  ;;  %p522_p6 = scmp.ge.s32.totalorder %s823_s17, 1 }
  0x3d   : > { %s520_s21 = sshll.u32 %s984_s8, 3  ;;  %v290_v3 = vld [vmem:[%s240_s11] sm:$0xff]  ;;  %v291_v4 = vld [vmem:[%s240_s11 + $0x8] sm:$0xff] }
  0x3e   : > { %s987_s23 = scalar_lea.vmem [#allocation7], %s520_s21  ;;  %s990_s25 = scalar_lea.vmem [#allocation8], %s520_s21 }
  0x3f   : > { %286 = vst [vmem:[%s987_s23] sm:$0xff] %v837_v0  ;;  %296 = sbr.rel (%p522_p6) target bundleno = 76 (0x4c), region = 44 }
  0x40   : > { %287 = vst [vmem:[%s990_s25] sm:$0xff] %v837_v0 }
  0x44   : > { %v297_v5 = vadd.f32 %v290_v3, %v288_v1  ;;  %v298_v6 = vadd.f32 %v291_v4, %v289_v2  ;;  %v300_v7 = vmul.f32 %v290_v3, %v288_v1  ;;  %v301_v8 = vmul.f32 %v291_v4, %v289_v2 }
  0x46   : > { %v303_v9 = vld [vmem:[%s987_s23] sm:$0xff]  ;;  %v299_v11 = vadd.f32 %v298_v6, %v297_v5  ;;  %v302_v12 = vadd.f32 %v301_v8, %v300_v7 }
  0x47   : > { %v306_v10 = vld [vmem:[%s990_s25] sm:$0xff] }
  0x48   : > { %v304_v13 = vadd.f32 %v303_v9, %v299_v11  ;;  %v307_v14 = vadd.f32 %v306_v10, %v302_v12 }
  0x4a   : > { %305 = vst [vmem:[%s987_s23] sm:$0xff] %v304_v13 }
  0x4b   : > { %308 = vst [vmem:[%s990_s25] sm:$0xff] %v307_v14 }
  0x4c PF: > { %p523_p2 = scmp.lt.s32.totalorder %s823_s17, 1 }
  0x4d   : > { %s524_s24 = sshll.u32 (!%p523_p2), %s823_s17, 4 }
  0x4e   : > { %312 = sbr.rel (%p523_p2) target bundleno = 101 (0x65), region = 48 }
  0x53   : > { %v313_v15 = vlaneseq  ;;  %v317_v16 = vstv %s524_s24  ;;  %v332_v29 = vld [vmem:[%s987_s23] sm:$0xff]  ;;  %v335_v30 = vld [vmem:[%s990_s25] sm:$0xff] }
  0x55   : > { %v314_v17 = vshrl.u32 %v313_v15, 7 }
  0x57   : > { %v315_v18 = vadd.s32 8, %v314_v17  ;;  %v318_v19 = vadd.s32 %v317_v16, %v314_v17 }
  0x59   : > { %v319_v20 = vadd.s32 %v317_v16, %v315_v18  ;;  %vm320_vm0 = vcmp.lt.s32.totalorder %v318_v19, 16 }
  0x5a   : > { %v322_v21 = vsel %vm320_vm0, %v288_v1, 0.0  ;;  %v324_v22 = vsel %vm320_vm0, %v290_v3, 0.0 }
  0x5b   : > { %vm321_vm1 = vcmp.lt.s32.totalorder %v319_v20, 16  ;;  %v326_v23 = vadd.f32 %v324_v22, %v322_v21  ;;  %v329_v24 = vmul.f32 %v324_v22, %v322_v21 }
  0x5c   : > { %v323_v25 = vsel %vm321_vm1, %v289_v2, 0.0  ;;  %v325_v26 = vsel %vm321_vm1, %v291_v4, 0.0 }
  0x5d   : > { %v327_v27 = vadd.f32 %v325_v26, %v323_v25  ;;  %v330_v28 = vmul.f32 %v325_v26, %v323_v25 }
  0x5f   : > { %v328_v31 = vadd.f32 %v327_v27, %v326_v23  ;;  %v331_v32 = vadd.f32 %v330_v28, %v329_v24 }
  0x61   : > { %v333_v33 = vadd.f32 %v332_v29, %v328_v31  ;;  %v336_v34 = vadd.f32 %v335_v30, %v331_v32 }
  0x63   : > { %334 = vst [vmem:[%s987_s23] sm:$0xff] %v333_v33 }
  0x64   : > { %337 = vst [vmem:[%s990_s25] sm:$0xff] %v336_v34 }
  0x65 PF: > { %s527_s4 = sshll.u32 %s823_s17, 3  ;;  %s356_s15 = sshll.u32 %s987_s23, 4  ;;  %s357_s15 = int_to_ptr.vmem [resolvable:$true] %s356_s15 }
  0x66   : > { %s354_s7 = scalar_lea.hbm %s1065_s2, %s527_s4  ;;  %s339_s26 = scalar_lea.sflag [#allocation4], %s984_s8 }
  0x67   : > { %s358_s20 = sshll.u32 %s354_s7, 4  ;;  %s712_s17 = scalar_lea.hbm %s1065_s2, 16  ;;  %s359_s20 = int_to_ptr.hbm [resolvable:$true] %s358_s20 }
  0x68   : > { %s706_s30 = sshra.s32 %s359_s20, 4  ;;  %s707_s30 = int_to_ptr.hbm [resolvable:$true] %s706_s30 }
  0x69   : > { %s708_s6 = scalar_lea.hbm %s707_s30, 8  ;;  %p713_p1 = scmp.lt.s32.totalorder %s707_s30, %s1065_s2 }
  0x6a   : > { %p709_p8 = scmp.ne.s32.totalorder %s707_s30, %s708_s6  ;;  %p714_p7 = scmp.lt.s32.totalorder %s712_s17, %s708_s6 }
  0x6c   : > { %p710_p4 = pnand %p709_p8, %p922_p12  ;;  %p715_p9 = por %p714_p7, %p713_p1 }
  0x6e   : > { %p711_p11 = pneg %p710_p4 }
  0x70   : > { %p716_p10 = pnand %p715_p9, %p711_p11 }
  0x72   : > { %719 = shalt.err (!%p716_p10)
}
  0x73   : > { %537 = dma.vmem_to_hbm [thread:$0]  (%p922_p12), %s357_s15, 128, %s359_s20, %s339_s26  }
  0x74   : > { %s368_s5 = scalar_lea.hbm %s1066_s3, %s527_s4  ;;  %s370_s7 = sshll.u32 %s990_s25, 4  ;;  %s371_s7 = int_to_ptr.vmem [resolvable:$true] %s370_s7 }
  0x75   : > { %s372_s10 = sshll.u32 %s368_s5, 4  ;;  %s344_s11 = scalar_lea.sflag [#allocation9], %s984_s8  ;;  %s373_s10 = int_to_ptr.hbm [resolvable:$true] %s372_s10 }
  0x76   : > { %s734_s30 = sshra.s32 %s373_s10, 4  ;;  %s740_s15 = scalar_lea.hbm %s1066_s3, 16  ;;  %s735_s30 = int_to_ptr.hbm [resolvable:$true] %s734_s30 }
  0x77   : > { %s736_s6 = scalar_lea.hbm %s735_s30, 8  ;;  %p741_p2 = scmp.lt.s32.totalorder %s735_s30, %s1066_s3 }
  0x78   : > { %p737_p3 = scmp.ne.s32.totalorder %s735_s30, %s736_s6  ;;  %p742_p8 = scmp.lt.s32.totalorder %s740_s15, %s736_s6 }
  0x7a   : > { %p738_p5 = pnand %p737_p3, %p922_p12  ;;  %p743_p4 = por %p742_p8, %p741_p2 }
  0x7c   : > { %p739_p6 = pneg %p738_p5 }
  0x7e   : > { %p744_p11 = pnand %p743_p4, %p739_p6 }
  0x80   : > { %747 = shalt.err (!%p744_p11)
}
  0x81   : > { %538 = dma.vmem_to_hbm [thread:$0]  (%p922_p12), %s371_s7, 128, %s373_s10, %s344_s11  }
  0x82 PF: > { %s384_s8 = sand.u32 1, %s803_s12   ;;  %p549_p1 = pnand %p510_p13, %p927_p0 }
  0x83   : > { %s385_s25 = scalar_lea.sflag [#allocation4], %s384_s8 }
  0x84   : > { %p550_p7 = pneg %p549_p1 }
  0x86   : > { %793 = dma.done.wait (%p550_p7), %s385_s25, 128  }
  0x87   : > { %795 = vsyncadd (%p550_p7), %s385_s25, 4294967168  ;;  %s395_s4 = scalar_lea.sflag [#allocation9], %s384_s8 }
  0x88   : > { %797 = dma.done.wait (%p550_p7), %s395_s4, 128  }
  0x89   : > { %799 = vsyncadd (%p550_p7), %s395_s4, 4294967168  ;;  %s26_s19 = sadd.s32 1, %s831_s19   ;;  %s1073_s12 = smov %s807_s13 }
  0x8a   : > { %p23_p9 = scmp.ge.s32.totalorder %s26_s19, 4   ;;  %s1074_s13 = smov %s811_s14 }
  0x8b   : > { %s1075_s14 = smov %s916_s27  ;;  %s1076_s15 = smov %s819_s16 }
  0x8c   : > { %s1053_s16 = smov 0   ;;  %s1077_s17 = smov %s827_s18 }
  0x8d   : > { %s1078_s18 = smov %s1080_s22  ;;  %25 = sbr.rel (!%p23_p9) target bundleno = 11 (0xb), region = 115 }
  0x92   :  { %401 = vsyncpa [#allocation3], 1 }
  0x93   :  { %403 = vsyncpa [#allocation3 + $0x1], 1 }
  0x94   :  { %404 = vsyncpa [#allocation6], 1 }
  0x95   :  { %406 = vsyncpa [#allocation6 + $0x1], 1 }
  0x96   :  { %407 = vsyncpa [#allocation4], 1 }
  0x97   :  { %409 = vsyncpa [#allocation4 + $0x1], 1 }
  0x98   :  { %410 = vsyncpa [#allocation9], 1 }
  0x99   :  { %412 = vsyncpa [#allocation9 + $0x1], 1 }

</bundles_post_ra>
